<compile_context>
chip_gen: v7x
topology: tpu7x:2x2x1
jax: 0.10.0
libtpu: 0.0.40
codegen_flags: <defaults>
</compile_context>

<pallas_src>
import functools

import jax
import jax.numpy as jnp
from jax.experimental import pallas as pl
from jax.experimental.pallas import tpu as pltpu

SEGW = 0.25          # CFG.segw
DICE_EPS = 1e-7      # smp.losses.DiceLoss default eps (smooth = 0.0)
NEG_LOGIT = -1e9     # pad value: sigmoid(-1e9) == 0 and BCE(x=-1e9, t=0) == 0


def _round_up(a, b):
    return (a + b - 1) // b * b


def _sublane_unit(*dtypes):
    """Native sublane multiple for the narrowest participating dtype."""
    min_bytes = min(jnp.dtype(d).itemsize for d in dtypes)
    return max(8, 32 // max(1, min_bytes))      # f32->8, bf16->16, int8->32


def _pick_row_tile(total, unit, cap):
    """Largest multiple of `unit` that divides `total` and is <= cap."""
    best = unit
    t = unit
    while t <= min(total, cap):
        if total % t == 0:
            best = t
        t += unit
    return best


# ---------------- BCE-with-logits (mean reduction) ----------------
def _bce_kernel(x_ref, t_ref, o_ref):
    i = pl.program_id(0)

    @pl.when(i == 0)
    def _():
        o_ref[...] = jnp.zeros_like(o_ref)

    x = x_ref[...].astype(jnp.float32)
    t = t_ref[...].astype(jnp.float32)
    # numerically stable form, matches torch.nn.BCEWithLogitsLoss
    elem = jnp.maximum(x, 0.0) - x * t + jnp.log1p(jnp.exp(-jnp.abs(x)))
    o_ref[...] += jnp.reshape(jnp.sum(elem), (1, 1))


def bce_with_logits_mean(outputs, targets):
    n_elems = outputs.size
    x = outputs.reshape(-1, outputs.shape[-1])
    t = targets.reshape(-1, outputs.shape[-1])
    B, L = x.shape

    unit = _sublane_unit(x.dtype, t.dtype)
    L_pad = _round_up(L, 128)
    B_pad = _round_up(B, unit)
    tile_b = _pick_row_tile(B_pad, unit, 128)

    if (B_pad != B) or (L_pad != L):
        pad = ((0, B_pad - B), (0, L_pad - L))
        x = jnp.pad(x, pad, constant_values=NEG_LOGIT)   # padded elems -> 0 loss
        t = jnp.pad(t, pad, constant_values=0)

    total = pl.pallas_call(
        _bce_kernel,
        grid=(B_pad // tile_b,),
        in_specs=[pl.BlockSpec((tile_b, L_pad), lambda i: (i, 0)),
                  pl.BlockSpec((tile_b, L_pad), lambda i: (i, 0))],
        out_specs=pl.BlockSpec((1, 1), lambda i: (0, 0)),
        out_shape=jax.ShapeDtypeStruct((1, 1), jnp.float32),
        compiler_params=pltpu.CompilerParams(
            dimension_semantics=("arbitrary",)),
    )(x, t)
    return total[0, 0] / n_elems


# ---------------- Dice per-row partial-sum kernel ----------------
def _dice_sums_kernel(p_ref, t_ref, inter_ref, psum_ref, tsum_ref,
                      acc_i, acc_p, acc_t, *, n_chunks):
    j = pl.program_id(1)

    @pl.when(j == 0)
    def _():
        acc_i[...] = jnp.zeros_like(acc_i)
        acc_p[...] = jnp.zeros_like(acc_p)
        acc_t[...] = jnp.zeros_like(acc_t)

    x = p_ref[...].astype(jnp.float32)
    t = t_ref[...].astype(jnp.float32)
    prob = jax.nn.sigmoid(x)          # == F.logsigmoid(x).exp() (from_logits)
    pt = prob * t

    def lane_fold(v):
        # (tile_r, n_chunks*128) -> (tile_r, 128): lane-aligned VPU adds only,
        # cross-lane (XLU) reduction deferred to the wrapper epilogue.
        acc = v[:, 0:128]
        for c in range(1, n_chunks):
            acc = acc + v[:, c * 128:(c + 1) * 128]
        return acc

    acc_i[...] += lane_fold(pt)
    acc_p[...] += lane_fold(prob)
    acc_t[...] += lane_fold(t)

    @pl.when(j == pl.num_programs(1) - 1)
    def _():
        inter_ref[...] = acc_i[...]
        psum_ref[...] = acc_p[...]
        tsum_ref[...] = acc_t[...]


def dice_loss_multilabel(masks_outputs, masks_targets_flat, *,
                         row_tile_cap=256, max_col_tile=4096,
                         target_block_elems=1 << 19):
    """smp multilabel DiceLoss(from_logits=True, smooth=0, eps=1e-7, dims=(0,2))."""
    N, C = masks_outputs.shape[0], masks_outputs.shape[1]
    HW = 1
    for d in masks_outputs.shape[2:]:
        HW *= d
    R = N * C

    # Free contiguous re-view; classes stay packed inside the row axis.
    p = masks_outputs.reshape(R, HW)
    t = masks_targets_flat.reshape(R, HW)

    unit = _sublane_unit(p.dtype, t.dtype)
    R_pad = _round_up(R, unit)                       # at most unit-1 pad rows
    tile_r = _pick_row_tile(R_pad, unit, row_tile_cap)

    tile_hw = (max(1, target_block_elems // tile_r) // 128) * 128
    tile_hw = max(128, min(tile_hw, max_col_tile, _round_up(HW, 128)))
    HW_pad = _round_up(HW, tile_hw)

    if (R_pad != R) or (HW_pad != HW):
        pad = ((0, R_pad - R), (0, HW_pad - HW))
        p = jnp.pad(p, pad, constant_values=NEG_LOGIT)   # sigmoid(pad) == 0
        t = jnp.pad(t, pad, constant_values=0)

    n_chunks = tile_hw // 128
    kernel = functools.partial(_dice_sums_kernel, n_chunks=n_chunks)
    out_block = pl.BlockSpec((tile_r, 128), lambda i, j: (i, 0))

    inter, psum, tsum = pl.pallas_call(
        kernel,
        grid=(R_pad // tile_r, HW_pad // tile_hw),
        in_specs=[pl.BlockSpec((tile_r, tile_hw), lambda i, j: (i, j)),
                  pl.BlockSpec((tile_r, tile_hw), lambda i, j: (i, j))],
        out_specs=[out_block, out_block, out_block],
        out_shape=[jax.ShapeDtypeStruct((R_pad, 128), jnp.float32)] * 3,
        scratch_shapes=[pltpu.VMEM((tile_r, 128), jnp.float32)] * 3,
        compiler_params=pltpu.CompilerParams(
            dimension_semantics=("parallel", "arbitrary")),
    )(p, t)

    # Tiny epilogue (O(R*128) values) in plain JAX.
    inter_c = jnp.sum(inter[:R], axis=1).reshape(N, C).sum(axis=0)
    psum_c = jnp.sum(psum[:R], axis=1).reshape(N, C).sum(axis=0)
    tsum_c = jnp.sum(tsum[:R], axis=1).reshape(N, C).sum(axis=0)

    card_c = psum_c + tsum_c
    score = (2.0 * inter_c) / jnp.maximum(card_c, DICE_EPS)
    loss_c = (1.0 - score) * (tsum_c > 0).astype(jnp.float32)
    return jnp.mean(loss_c)


# ---------------- CustomLoss.forward ----------------
def custom_loss(outputs, targets, masks_outputs, masks_targets):
    loss1 = bce_with_logits_mean(outputs, targets)
    # .float() casts are performed inside the kernels (saves an HBM pass);
    # .flatten(0, 1) is a free reshape.
    mt = masks_targets.reshape((-1,) + masks_targets.shape[2:])
    loss2 = dice_loss_multilabel(masks_outputs, mt)
    return loss1 + loss2 * SEGW


# ---------------- plain-JAX reference (sanity check) ----------------
def _reference(outputs, targets, masks_outputs, masks_targets):
    x = outputs.astype(jnp.float32)
    t = targets.astype(jnp.float32)
    bce = jnp.mean(jnp.maximum(x, 0.0) - x * t + jnp.log1p(jnp.exp(-jnp.abs(x))))
    mo = jax.nn.sigmoid(masks_outputs.astype(jnp.float32))
    mt = masks_targets.astype(jnp.float32).reshape((-1,) + masks_targets.shape[2:])
    N, C = mo.shape[0], mo.shape[1]
    mo = mo.reshape(N, C, -1)
    mt = mt.reshape(N, C, -1)
    inter = jnp.sum(mo * mt, axis=(0, 2))
    card = jnp.sum(mo + mt, axis=(0, 2))
    score = 2.0 * inter / jnp.maximum(card, DICE_EPS)
    loss_c = (1.0 - score) * (jnp.sum(mt, axis=(0, 2)) > 0)
    return bce + SEGW * jnp.mean(loss_c)


if __name__ == "__main__":
    key = jax.random.PRNGKey(0)
    k1, k2, k3, k4 = jax.random.split(key, 4)

    # shapes consistent with the forward: classification head (B, L),
    # seg logits (B*T, NC, H, W), seg targets (B, T, NC, H, W), NC = 3
    B, L = 2, 8
    Bm, T, C, H, W = 2, 4, 3, 16, 16

    outputs = jax.random.normal(k1, (B, L), jnp.float32)
    targets = (jax.random.uniform(k2, (B, L)) > 0.5).astype(jnp.float32)
    masks_outputs = jax.random.normal(k3, (Bm * T, C, H, W), jnp.float32)
    # Targets kept narrow (bf16 is exact for {0,1}) -> halves their HBM
    # traffic; the kernel casts to f32 internally (== the module's .float()).
    masks_targets = (jax.random.uniform(k4, (Bm, T, C, H, W)) > 0.5).astype(jnp.bfloat16)

    loss_fn = jax.jit(custom_loss)
    loss = loss_fn(outputs, targets, masks_outputs, masks_targets)
    jax.block_until_ready(loss)

    ref = _reference(outputs, targets, masks_outputs, masks_targets)
    assert abs(float(loss) - float(ref)) < 1e-3, (float(loss), float(ref))
    print("KERNEL_OK")
</pallas_src>

<mosaic_0001>
module attributes {stable_mosaic.version = 11 : i64} {
  func.func @_dice_sums_kernel(%arg0: i32, %arg1: i32, %arg2: memref<32x256xf32, #tpu.memory_space<vmem>>, %arg3: memref<32x256xbf16, #tpu.memory_space<vmem>>, %arg4: memref<32x128xf32, #tpu.memory_space<vmem>>, %arg5: memref<32x128xf32, #tpu.memory_space<vmem>>, %arg6: memref<32x128xf32, #tpu.memory_space<vmem>>, %arg7: memref<32x128xf32, #tpu.memory_space<vmem>>, %arg8: memref<32x128xf32, #tpu.memory_space<vmem>>, %arg9: memref<32x128xf32, #tpu.memory_space<vmem>>) attributes {dimension_semantics = [#tpu.dimension_semantics<parallel>, #tpu.dimension_semantics<arbitrary>], iteration_bounds = array<i64: 1, 1>, scalar_prefetch = 0 : i64, scratch_operands = 3 : i64, tpu.core_type = #tpu.core_type<tc>, window_params = [{transform_indices = @transform_0, window_bounds = array<i64: 32, 256>}, {transform_indices = @transform_1, window_bounds = array<i64: 32, 256>}, {transform_indices = @transform_2, window_bounds = array<i64: 32, 128>}, {transform_indices = @transform_3, window_bounds = array<i64: 32, 128>}, {transform_indices = @transform_4, window_bounds = array<i64: 32, 128>}]} {
    %c0_i32 = arith.constant 0 : i32
    %0 = arith.cmpi eq, %arg1, %c0_i32 : i32
    %1 = arith.extui %0 : i1 to i32
    %c0_i32_0 = arith.constant 0 : i32
    %2 = arith.cmpi ne, %1, %c0_i32_0 : i32
    scf.if %2 {
      %cst_18 = arith.constant 0.000000e+00 : f32
      %33 = vector.broadcast %cst_18 : f32 to vector<32x128xf32>
      %c0_19 = arith.constant 0 : index
      %c0_20 = arith.constant 0 : index
      %34 = vector.load %arg7[%c0_19, %c0_20] : memref<32x128xf32, #tpu.memory_space<vmem>>, vector<32x128xf32>
      tpu.vector_store %arg7[%c0_19, %c0_20], %33 {strides = array<i32>} : memref<32x128xf32, #tpu.memory_space<vmem>>, vector<32x128xf32>,
      %cst_21 = arith.constant 0.000000e+00 : f32
      %35 = vector.broadcast %cst_21 : f32 to vector<32x128xf32>
      %c0_22 = arith.constant 0 : index
      %c0_23 = arith.constant 0 : index
      %36 = vector.load %arg8[%c0_22, %c0_23] : memref<32x128xf32, #tpu.memory_space<vmem>>, vector<32x128xf32>
      tpu.vector_store %arg8[%c0_22, %c0_23], %35 {strides = array<i32>} : memref<32x128xf32, #tpu.memory_space<vmem>>, vector<32x128xf32>,
      %cst_24 = arith.constant 0.000000e+00 : f32
      %37 = vector.broadcast %cst_24 : f32 to vector<32x128xf32>
      %c0_25 = arith.constant 0 : index
      %c0_26 = arith.constant 0 : index
      %38 = vector.load %arg9[%c0_25, %c0_26] : memref<32x128xf32, #tpu.memory_space<vmem>>, vector<32x128xf32>
      tpu.vector_store %arg9[%c0_25, %c0_26], %37 {strides = array<i32>} : memref<32x128xf32, #tpu.memory_space<vmem>>, vector<32x128xf32>,
    } else {
    }
    %c0 = arith.constant 0 : index
    %c0_1 = arith.constant 0 : index
    %3 = vector.load %arg2[%c0, %c0_1] : memref<32x256xf32, #tpu.memory_space<vmem>>, vector<32x256xf32>
    %c0_2 = arith.constant 0 : index
    %c0_3 = arith.constant 0 : index
    %4 = vector.load %arg3[%c0_2, %c0_3] : memref<32x256xbf16, #tpu.memory_space<vmem>>, vector<32x256xbf16>
    %5 = arith.extf %4 : vector<32x256xbf16> to vector<32x256xf32>
    %6 = arith.negf %3 : vector<32x256xf32>
    %7 = math.exp %6 : vector<32x256xf32>
    %cst = arith.constant 1.000000e+00 : f32
    %8 = vector.broadcast %cst : f32 to vector<32x256xf32>
    %9 = arith.addf %8, %7 : vector<32x256xf32>
    %10 = arith.divf %8, %9 : vector<32x256xf32>
    %11 = arith.mulf %10, %5 : vector<32x256xf32>
    %c0_4 = arith.constant 0 : index
    %c0_5 = arith.constant 0 : index
    %12 = vector.load %arg7[%c0_4, %c0_5] : memref<32x128xf32, #tpu.memory_space<vmem>>, vector<32x128xf32>
    %13 = vector.extract_strided_slice %11 {offsets = [0, 0], sizes = [32, 128], strides = [1, 1]} : vector<32x256xf32> to vector<32x128xf32>
    %14 = vector.extract_strided_slice %11 {offsets = [0, 128], sizes = [32, 128], strides = [1, 1]} : vector<32x256xf32> to vector<32x128xf32>
    %15 = arith.addf %13, %14 : vector<32x128xf32>
    %16 = arith.addf %12, %15 : vector<32x128xf32>
    %c0_6 = arith.constant 0 : index
    %c0_7 = arith.constant 0 : index
    %17 = vector.load %arg7[%c0_6, %c0_7] : memref<32x128xf32, #tpu.memory_space<vmem>>, vector<32x128xf32>
    tpu.vector_store %arg7[%c0_6, %c0_7], %16 {strides = array<i32>} : memref<32x128xf32, #tpu.memory_space<vmem>>, vector<32x128xf32>,
    %c0_8 = arith.constant 0 : index
    %c0_9 = arith.constant 0 : index
    %18 = vector.load %arg8[%c0_8, %c0_9] : memref<32x128xf32, #tpu.memory_space<vmem>>, vector<32x128xf32>
    %19 = vector.extract_strided_slice %10 {offsets = [0, 0], sizes = [32, 128], strides = [1, 1]} : vector<32x256xf32> to vector<32x128xf32>
    %20 = vector.extract_strided_slice %10 {offsets = [0, 128], sizes = [32, 128], strides = [1, 1]} : vector<32x256xf32> to vector<32x128xf32>
    %21 = arith.addf %19, %20 : vector<32x128xf32>
    %22 = arith.addf %18, %21 : vector<32x128xf32>
    %c0_10 = arith.constant 0 : index
    %c0_11 = arith.constant 0 : index
    %23 = vector.load %arg8[%c0_10, %c0_11] : memref<32x128xf32, #tpu.memory_space<vmem>>, vector<32x128xf32>
    tpu.vector_store %arg8[%c0_10, %c0_11], %22 {strides = array<i32>} : memref<32x128xf32, #tpu.memory_space<vmem>>, vector<32x128xf32>,
    %c0_12 = arith.constant 0 : index
    %c0_13 = arith.constant 0 : index
    %24 = vector.load %arg9[%c0_12, %c0_13] : memref<32x128xf32, #tpu.memory_space<vmem>>, vector<32x128xf32>
    %25 = vector.extract_strided_slice %5 {offsets = [0, 0], sizes = [32, 128], strides = [1, 1]} : vector<32x256xf32> to vector<32x128xf32>
    %26 = vector.extract_strided_slice %5 {offsets = [0, 128], sizes = [32, 128], strides = [1, 1]} : vector<32x256xf32> to vector<32x128xf32>
    %27 = arith.addf %25, %26 : vector<32x128xf32>
    %28 = arith.addf %24, %27 : vector<32x128xf32>
    %c0_14 = arith.constant 0 : index
    %c0_15 = arith.constant 0 : index
    %29 = vector.load %arg9[%c0_14, %c0_15] : memref<32x128xf32, #tpu.memory_space<vmem>>, vector<32x128xf32>
    tpu.vector_store %arg9[%c0_14, %c0_15], %28 {strides = array<i32>} : memref<32x128xf32, #tpu.memory_space<vmem>>, vector<32x128xf32>,
    %c0_i32_16 = arith.constant 0 : i32
    %30 = arith.cmpi eq, %arg1, %c0_i32_16 : i32
    %31 = arith.extui %30 : i1 to i32
    %c0_i32_17 = arith.constant 0 : i32
    %32 = arith.cmpi ne, %31, %c0_i32_17 : i32
    scf.if %32 {
      %c0_18 = arith.constant 0 : index
      %c0_19 = arith.constant 0 : index
      %33 = vector.load %arg7[%c0_18, %c0_19] : memref<32x128xf32, #tpu.memory_space<vmem>>, vector<32x128xf32>
      %c0_20 = arith.constant 0 : index
      %c0_21 = arith.constant 0 : index
      %34 = vector.load %arg4[%c0_20, %c0_21] : memref<32x128xf32, #tpu.memory_space<vmem>>, vector<32x128xf32>
      tpu.vector_store %arg4[%c0_20, %c0_21], %33 {strides = array<i32>} : memref<32x128xf32, #tpu.memory_space<vmem>>, vector<32x128xf32>,
      %c0_22 = arith.constant 0 : index
      %c0_23 = arith.constant 0 : index
      %35 = vector.load %arg8[%c0_22, %c0_23] : memref<32x128xf32, #tpu.memory_space<vmem>>, vector<32x128xf32>
      %c0_24 = arith.constant 0 : index
      %c0_25 = arith.constant 0 : index
      %36 = vector.load %arg5[%c0_24, %c0_25] : memref<32x128xf32, #tpu.memory_space<vmem>>, vector<32x128xf32>
      tpu.vector_store %arg5[%c0_24, %c0_25], %35 {strides = array<i32>} : memref<32x128xf32, #tpu.memory_space<vmem>>, vector<32x128xf32>,
      %c0_26 = arith.constant 0 : index
      %c0_27 = arith.constant 0 : index
      %37 = vector.load %arg9[%c0_26, %c0_27] : memref<32x128xf32, #tpu.memory_space<vmem>>, vector<32x128xf32>
      %c0_28 = arith.constant 0 : index
      %c0_29 = arith.constant 0 : index
      %38 = vector.load %arg6[%c0_28, %c0_29] : memref<32x128xf32, #tpu.memory_space<vmem>>, vector<32x128xf32>
      tpu.vector_store %arg6[%c0_28, %c0_29], %37 {strides = array<i32>} : memref<32x128xf32, #tpu.memory_space<vmem>>, vector<32x128xf32>,
    } else {
    }
    return
  }
  func.func @transform_0(%arg0: i32, %arg1: i32) -> (i32, i32) {
    %c0_i32 = arith.constant 0 : i32
    return %arg0, %arg1 : i32, i32
  }
  func.func @transform_1(%arg0: i32, %arg1: i32) -> (i32, i32) {
    %c0_i32 = arith.constant 0 : i32
    return %arg0, %arg1 : i32, i32
  }
  func.func @transform_2(%arg0: i32, %arg1: i32) -> (i32, i32) {
    %c0_i32 = arith.constant 0 : i32
    %c0_i32_0 = arith.constant 0 : i32
    return %arg0, %c0_i32 : i32, i32
  }
  func.func @transform_3(%arg0: i32, %arg1: i32) -> (i32, i32) {
    %c0_i32 = arith.constant 0 : i32
    %c0_i32_0 = arith.constant 0 : i32
    return %arg0, %c0_i32 : i32, i32
  }
  func.func @transform_4(%arg0: i32, %arg1: i32) -> (i32, i32) {
    %c0_i32 = arith.constant 0 : i32
    %c0_i32_0 = arith.constant 0 : i32
    return %arg0, %c0_i32 : i32, i32
  }
}

module attributes {stable_mosaic.version = 11 : i64} {
  func.func @_bce_kernel(%arg0: i32, %arg1: memref<8x128xf32, #tpu.memory_space<vmem>>, %arg2: memref<8x128xf32, #tpu.memory_space<vmem>>, %arg3: memref<1x1xf32, #tpu.memory_space<vmem>>) attributes {dimension_semantics = [#tpu.dimension_semantics<arbitrary>], iteration_bounds = array<i64: 1>, scalar_prefetch = 0 : i64, scratch_operands = 0 : i64, tpu.core_type = #tpu.core_type<tc>, window_params = [{transform_indices = @transform_0, window_bounds = array<i64: 8, 128>}, {transform_indices = @transform_1, window_bounds = array<i64: 8, 128>}, {pipeline_mode = #tpu.pipeline_mode<synchronous>, transform_indices = @transform_2, window_bounds = array<i64: 1, 1>}]} {
    %c0_i32 = arith.constant 0 : i32
    %0 = arith.cmpi eq, %arg0, %c0_i32 : i32
    %1 = arith.extui %0 : i1 to i32
    %c0_i32_0 = arith.constant 0 : i32
    %2 = arith.cmpi ne, %1, %c0_i32_0 : i32
    scf.if %2 {
      %cst_10 = arith.constant 0.000000e+00 : f32
      %23 = vector.broadcast %cst_10 : f32 to vector<1x1xf32>
      %c0_11 = arith.constant 0 : index
      %c0_12 = arith.constant 0 : index
      %24 = vector.load %arg3[%c0_11, %c0_12] : memref<1x1xf32, #tpu.memory_space<vmem>>, vector<1x1xf32>
      tpu.vector_store %arg3[%c0_11, %c0_12], %23 {strides = array<i32>} : memref<1x1xf32, #tpu.memory_space<vmem>>, vector<1x1xf32>,
    } else {
    }
    %c0 = arith.constant 0 : index
    %c0_1 = arith.constant 0 : index
    %3 = vector.load %arg1[%c0, %c0_1] : memref<8x128xf32, #tpu.memory_space<vmem>>, vector<8x128xf32>
    %c0_2 = arith.constant 0 : index
    %c0_3 = arith.constant 0 : index
    %4 = vector.load %arg2[%c0_2, %c0_3] : memref<8x128xf32, #tpu.memory_space<vmem>>, vector<8x128xf32>
    %cst = arith.constant 0.000000e+00 : f32
    %5 = vector.broadcast %cst : f32 to vector<8x128xf32>
    %6 = arith.maximumf %3, %5 : vector<8x128xf32>
    %7 = arith.mulf %3, %4 : vector<8x128xf32>
    %8 = arith.subf %6, %7 : vector<8x128xf32>
    %9 = math.absf %3 : vector<8x128xf32>
    %cst_4 = arith.constant 0.000000e+00 : f32
    %10 = vector.broadcast %cst_4 : f32 to vector<8x128xf32>
    %11 = arith.subf %10, %9 : vector<8x128xf32>
    %12 = math.exp %11 : vector<8x128xf32>
    %13 = math.log1p %12 : vector<8x128xf32>
    %14 = arith.addf %8, %13 : vector<8x128xf32>
    %c0_5 = arith.constant 0 : index
    %c0_6 = arith.constant 0 : index
    %15 = vector.load %arg3[%c0_5, %c0_6] : memref<1x1xf32, #tpu.memory_space<vmem>>, vector<1x1xf32>
    %16 = vector.shape_cast %14 : vector<8x128xf32> to vector<1x8x128xf32>
    %cst_7 = arith.constant dense<0.000000e+00> : vector<1xf32>
    %17 = vector.multi_reduction <add>, %16, %cst_7 [1, 2] : vector<1x8x128xf32> to vector<1xf32>
    %18 = vector.shape_cast %17 : vector<1xf32> to vector<1x1x1xf32>
    %19 = vector.extract %18[0, 0, 0] : f32 from vector<1x1x1xf32>
    %20 = vector.broadcast %19 : f32 to vector<1x1xf32>
    %21 = arith.addf %15, %20 : vector<1x1xf32>
    %c0_8 = arith.constant 0 : index
    %c0_9 = arith.constant 0 : index
    %22 = vector.load %arg3[%c0_8, %c0_9] : memref<1x1xf32, #tpu.memory_space<vmem>>, vector<1x1xf32>
    tpu.vector_store %arg3[%c0_8, %c0_9], %21 {strides = array<i32>} : memref<1x1xf32, #tpu.memory_space<vmem>>, vector<1x1xf32>,
    return
  }
  func.func @transform_0(%arg0: i32) -> (i32, i32) {
    %c0_i32 = arith.constant 0 : i32
    %c0_i32_0 = arith.constant 0 : i32
    return %arg0, %c0_i32 : i32, i32
  }
  func.func @transform_1(%arg0: i32) -> (i32, i32) {
    %c0_i32 = arith.constant 0 : i32
    %c0_i32_0 = arith.constant 0 : i32
    return %arg0, %c0_i32 : i32, i32
  }
  func.func @transform_2(%arg0: i32) -> (i32, i32) {
    %c0_i32 = arith.constant 0 : i32
    %c0_i32_0 = arith.constant 0 : i32
    %c0_i32_1 = arith.constant 0 : i32
    return %c0_i32, %c0_i32_0 : i32, i32
  }
}

</mosaic_0001>

<bundles_post_ra>
// kernel: custom_loss.3
= control target key start
LH: loop header
LB: loop body
LE: loop exit
PB: predicated region body
PF: predicated region fallthrough
CT: control target
= control target key end

     0   :  { %s378_s0 = inlined_call_operand.vmem [shape: f32[32,256], index: 0, kind: input, shape index: {}]   ;;  %s379_s1 = inlined_call_operand.vmem [shape: bf16[32,256], index: 1, kind: input, shape index: {}]   ;;  %s380_s4 = inlined_call_operand.vmem [shape: f32[32,128], index: 4, kind: output, shape index: {2}]   ;;  %s381_s3 = inlined_call_operand.vmem [shape: f32[32,128], index: 3, kind: output, shape index: {1}]   ;;  %s382_s2 = inlined_call_operand.vmem [shape: f32[32,128], index: 2, kind: output, shape index: {0}]  }
   0x1   :  { %v30_v0 = vld [vmem:[%s378_s0] sm:$0xff]  ;;  %v31_v1 = vld [vmem:[%s378_s0 + $0x8] sm:$0xff]  ;;  %v32_v5 = vld [vmem:[%s378_s0 + $0x10] sm:$0xff] }
   0x2   :  { %v267_v2 = vld [vmem:[%s379_s1] sm:$0xff]  ;;  %v193_v3 = vmul.f32 -1.442695, %v30_v0  ;;  %v194_v4 = vmul.f32 -1.442695, %v31_v1  ;;  %v33_v6 = vld [vmem:[%s378_s0 + $0x18] sm:$0xff] }
   0x3   :  { %v42_v7 = vunpack.c.l.bf16 %v267_v2  ;;  %v43_v8 = vunpack.c.h.bf16 %v267_v2  ;;  %v280_v9 = vld [vmem:[%s379_s1 + $0x8] sm:$0xff]  ;;  %v195_v10 = vmul.f32 -1.442695, %v32_v5  ;;  %v196_v11 = vmul.f32 -1.442695, %v33_v6  ;;  %v34_v12 = vld [vmem:[%s378_s0 + $0x20] sm:$0xff] }
   0x4   :  { %201 = vpow2.f32 %v193_v3  ;;  %v44_v13 = vunpack.c.l.bf16 %v280_v9  ;;  %v45_v14 = vunpack.c.h.bf16 %v280_v9  ;;  %v35_v15 = vld [vmem:[%s378_s0 + $0x28] sm:$0xff]  ;;  %v293_v16 = vld [vmem:[%s379_s1 + $0x10] sm:$0xff]  ;;  %v197_v17 = vmul.f32 -1.442695, %v34_v12  ;;  %v37_v22 = vld [vmem:[%s378_s0 + $0x38] sm:$0xff] }
   0x5   :  { %v36_v18 = vld [vmem:[%s378_s0 + $0x30] sm:$0xff]  ;;  %203 = vpow2.f32 %v194_v4  ;;  %v46_v19 = vunpack.c.l.bf16 %v293_v16  ;;  %v47_v20 = vunpack.c.h.bf16 %v293_v16  ;;  %v198_v21 = vmul.f32 -1.442695, %v35_v15  ;;  %v306_v23 = vld [vmem:[%s379_s1 + $0x18] sm:$0xff] }
   0x6   :  { %205 = vpow2.f32 %v195_v10  ;;  %v48_v24 = vunpack.c.l.bf16 %v306_v23  ;;  %v49_v25 = vunpack.c.h.bf16 %v306_v23  ;;  %v199_v26 = vmul.f32 -1.442695, %v36_v18 }
   0x7   :  { %207 = vpow2.f32 %v196_v11  ;;  %v200_v27 = vmul.f32 -1.442695, %v37_v22  ;;  %v142_v28 = vadd.f32 %v43_v8, %v42_v7  ;;  %v143_v29 = vadd.f32 %v45_v14, %v44_v13 }
   0x8   :  { %209 = vpow2.f32 %v197_v17  ;;  %v144_v30 = vadd.f32 %v47_v20, %v46_v19  ;;  %v145_v31 = vadd.f32 %v49_v25, %v48_v24 }
   0x9   :  { %211 = vpow2.f32 %v198_v21  ;;  %177 = vst [vmem:[%s380_s4] sm:$0xff] %v142_v28  ;;  %178 = vst [vmem:[%s380_s4 + $0x8] sm:$0xff] %v143_v29 }
   0xa   :  { %213 = vpow2.f32 %v199_v26  ;;  %179 = vst [vmem:[%s380_s4 + $0x10] sm:$0xff] %v144_v30  ;;  %180 = vst [vmem:[%s380_s4 + $0x18] sm:$0xff] %v145_v31 }
   0xb   :  { %215 = vpow2.f32 %v200_v27 }
   0xe   :  { %v202_v32 = vpop.eup %201 }
   0xf   :  { %v204_v33 = vpop.eup %203  ;;  %v74_v34 = vadd.f32 1.0, %v202_v32 }
  0x10   :  { %v206_v35 = vpop.eup %205  ;;  %v75_v36 = vadd.f32 1.0, %v204_v33 }
  0x11   :  { %v208_v37 = vpop.eup %207  ;;  %217 = vrcp.f32 %v74_v34  ;;  %v76_v38 = vadd.f32 1.0, %v206_v35 }
  0x12   :  { %v210_v39 = vpop.eup %209  ;;  %219 = vrcp.f32 %v75_v36  ;;  %v77_v40 = vadd.f32 1.0, %v208_v37 }
  0x13   :  { %v212_v41 = vpop.eup %211  ;;  %221 = vrcp.f32 %v76_v38  ;;  %v78_v42 = vadd.f32 1.0, %v210_v39 }
  0x14   :  { %v214_v43 = vpop.eup %213  ;;  %223 = vrcp.f32 %v77_v40  ;;  %v79_v44 = vadd.f32 1.0, %v212_v41 }
  0x15   :  { %v216_v45 = vpop.eup %215  ;;  %225 = vrcp.f32 %v78_v42  ;;  %v80_v46 = vadd.f32 1.0, %v214_v43 }
  0x16   :  { %227 = vrcp.f32 %v79_v44  ;;  %v81_v47 = vadd.f32 1.0, %v216_v45 }
  0x17   :  { %229 = vrcp.f32 %v80_v46 }
  0x18   :  { %231 = vrcp.f32 %v81_v47 }
  0x1b   :  { %v218_v48 = vpop.eup %217 }
  0x1c   :  { %v220_v49 = vpop.eup %219  ;;  %v98_v50 = vmul.f32 %v218_v48, %v42_v7 }
  0x1d   :  { %v222_v51 = vpop.eup %221  ;;  %v99_v52 = vmul.f32 %v220_v49, %v43_v8  ;;  %v126_v53 = vadd.f32 %v220_v49, %v218_v48 }
  0x1e   :  { %v224_v54 = vpop.eup %223  ;;  %v100_v55 = vmul.f32 %v222_v51, %v44_v13 }
  0x1f   :  { %v226_v56 = vpop.eup %225  ;;  %v110_v57 = vadd.f32 %v99_v52, %v98_v50  ;;  %v101_v58 = vmul.f32 %v224_v54, %v45_v14  ;;  %169 = vst [vmem:[%s381_s3] sm:$0xff] %v126_v53  ;;  %v127_v59 = vadd.f32 %v224_v54, %v222_v51 }
  0x20   :  { %v228_v60 = vpop.eup %227  ;;  %v102_v61 = vmul.f32 %v226_v56, %v46_v19 }
  0x21   :  { %v230_v62 = vpop.eup %229  ;;  %161 = vst [vmem:[%s382_s2] sm:$0xff] %v110_v57  ;;  %v111_v63 = vadd.f32 %v101_v58, %v100_v55  ;;  %v103_v0 = vmul.f32 %v228_v60, %v47_v20  ;;  %170 = vst [vmem:[%s381_s3 + $0x8] sm:$0xff] %v127_v59  ;;  %v128_v1 = vadd.f32 %v228_v60, %v226_v56 }
  0x22   :  { %v232_v2 = vpop.eup %231  ;;  %v104_v3 = vmul.f32 %v230_v62, %v48_v24 }
  0x23   :  { %162 = vst [vmem:[%s382_s2 + $0x8] sm:$0xff] %v111_v63  ;;  %v112_v4 = vadd.f32 %v103_v0, %v102_v61  ;;  %v105_v5 = vmul.f32 %v232_v2, %v49_v25  ;;  %171 = vst [vmem:[%s381_s3 + $0x10] sm:$0xff] %v128_v1  ;;  %v129_v6 = vadd.f32 %v232_v2, %v230_v62 }
  0x25   :  { %163 = vst [vmem:[%s382_s2 + $0x10] sm:$0xff] %v112_v4  ;;  %v113_v7 = vadd.f32 %v105_v5, %v104_v3  ;;  %172 = vst [vmem:[%s381_s3 + $0x18] sm:$0xff] %v129_v6 }
  0x27   :  { %164 = vst [vmem:[%s382_s2 + $0x18] sm:$0xff] %v113_v7 }

// kernel: custom_loss.2
= control target key start
LH: loop header
LB: loop body
LE: loop exit
PB: predicated region body
PF: predicated region fallthrough
CT: control target
= control target key end

     0   :  { %s134_s0 = inlined_call_operand.vmem [shape: f32[8,128], index: 0, kind: input, shape index: {}]   ;;  %s135_s1 = inlined_call_operand.vmem [shape: f32[8,128], index: 1, kind: input, shape index: {}]   ;;  %s136_s2 = inlined_call_operand.hbm [shape: f32[1,1], index: 2, kind: output, shape index: {}]  }
   0x1   :  { %v18_v0 = vld [vmem:[%s134_s0] sm:$0xff] }
   0x2   :  { %7 = vsyncpa [#allocation3], 0  ;;  %v23_v1 = vand.u32 2147483647, %v18_v0  ;;  %v19_v7 = vld [vmem:[%s135_s1] sm:$0xff]  ;;  %v20_v9 = vmax.f32 %v18_v0, 0.0 }
   0x3   :  { %v21_v10 = vmul.f32 %v19_v7, %v18_v0  ;;  %vm16_vm1 = vcmask 0   ;;  %v97_v18 = vmov 0.0   ;;  %s98_s0 = smov [#allocation2]  }
   0x4   :  { %v24_v2 = vsub.f32 0.0, %v23_v1  ;;  %17 = vst.msk [vmem:[#allocation2] sm:$0x1] %vm16_vm1, %v97_v18  ;;  %s57_s1 = sshll.u32 %s98_s0, 4  ;;  %s58_s1 = int_to_ptr.vmem [resolvable:$true] %s57_s1 }
   0x5   :  { %v22_v14 = vsub.f32 %v20_v9, %v21_v10  ;;  %s73_s14 = scalar_lea.vmem %s58_s1, 16  ;;  %s77_s15 = scalar_lea.vmem %s58_s1, 32 }
   0x6   :  { %v25_v3 = vmul.f32 1.442695, %v24_v2  ;;  %p74_p0 = scmp.ne.s32.totalorder %s58_s1, %s73_s14  ;;  %p78_p1 = scmp.lt.s32.totalorder %s58_s1, %s58_s1 }
   0x7   :  { %p79_p2 = scmp.lt.s32.totalorder %s77_s15, %s73_s14 }
   0x8   :  { %69 = vpow2.f32 %v25_v3 }
   0x9   :  { %p80_p3 = por %p79_p2, %p78_p1 }
   0xb   :  { %v37_v26 = vld [vmem:[#allocation2] sm:$0x1]  ;;  %p81_p4 = pnand %p80_p3, %p74_p0 }
  0x12   :  { %v70_v4 = vpop.eup %69 }
  0x13   :  { %v27_v5 = vadd.f32 1.0, %v70_v4  ;;  %v30_v6 = vmul.f32 -0.5, %v70_v4  ;;  %v33_v11 = vand.u32 2147483647, %v70_v4 }
  0x15   :  { %71 = vlog2.f32 %v27_v5  ;;  %v31_v8 = vadd.f32 1.0, %v30_v6  ;;  %vm34_vm0 = vcmp.lt.f32.partialorder %v33_v11, 0.0004427343 }
  0x17   :  { %v32_v12 = vmul.f32 %v70_v4, %v31_v8 }
  0x1f   :  { %v72_v13 = vpop.eup %71 }
  0x20   :  { %v29_v15 = vmul.f32 0.6931472, %v72_v13 }
  0x22   :  { %v35_v16 = vsel %vm34_vm0, %v32_v12, %v29_v15 }
  0x23   :  { %v36_v17 = vadd.f32 %v35_v16, %v22_v14 }
  0x25   :  { %38 = vadd.xlane.f32.xlu0 %v36_v17 }
  0xb2   :  { %v39_v19 = vpop.xlane.xlu0 %38 }
  0xb3   :  { %v40_v20 = vrot.slane %v39_v19, 4 }
  0xb5   :  { %v41_v21 = vadd.f32 %v40_v20, %v39_v19 }
  0xb7   :  { %v42_v22 = vrot.slane %v41_v21, 2 }
  0xb9   :  { %v43_v23 = vadd.f32 %v42_v22, %v41_v21 }
  0xbb   :  { %v44_v24 = vrot.slane %v43_v23, 1 }
  0xbd   :  { %v45_v25 = vadd.f32 %v44_v24, %v43_v23 }
  0xbf   :  { %65 = vpush %v45_v25 }
  0xf0   :  { %s66_s13 = spop %65 }
  0xf1   :  { %v47_v27 = vstv %s66_s13 }
  0xf2   :  { %v48_v28 = vadd.f32 %v47_v27, %v37_v26 }
  0xf4   :  { %50 = vst.msk [vmem:[#allocation2] sm:$0x1] %vm16_vm1, %v48_v28 }
  0xf5   :  { %84 = shalt.err (!%p81_p4)
}
  0xf6   :  { %s85_s18 = scalar_lea.hbm %s136_s2, 16 }
  0xf7   :  { %p86_p5 = scmp.ne.s32.totalorder %s136_s2, %s85_s18  ;;  %p89_p6 = scmp.lt.u32.totalorder %s85_s18, %s136_s2 }
  0xf9   :  { %p91_p7 = pnand %p89_p6, %p86_p5 }
  0xfb   :  { %94 = shalt.err (!%p91_p7)
}
  0xfc   :  { %60 = dma.vmem_to_hbm [thread:$0]  %s58_s1, 16, %s136_s2, [#allocation3]  }
  0xfd   :  { %95 = dma.done.wait [#allocation3], 16  }
  0xfe   :  { %96 = vsyncadd [#allocation3], 4294967280 }
  0xff   :  { %64 = vsyncpa [#allocation3], 1 }

</bundles_post_ra>
